<compile_context>
chip_gen: v6e
topology: v6e:2x2x1
jax: 0.10.0
libtpu: 0.0.40
codegen_flags: <defaults>
</compile_context>

<pallas_src>
import jax
import jax.numpy as jnp
from jax.experimental import pallas as pl
from jax.experimental.pallas import tpu as pltpu


# ----------------------------------------------------------------------------
# helpers
# ----------------------------------------------------------------------------
def _pick_tile(dim, multiple, cap):
    """Largest divisor of `dim` that is a multiple of `multiple` and <= cap.
    Falls back to the full extent (block == array dim satisfies the (8,128)
    rule) when no such divisor exists."""
    best = 0
    cand = multiple
    limit = min(dim, cap)
    while cand <= limit:
        if dim % cand == 0:
            best = cand
        cand += multiple
    return best if best > 0 else dim


# ----------------------------------------------------------------------------
# Kernel 1: fused stacked gate projection + activations
# ----------------------------------------------------------------------------
def _gate_projection(x2, w, b, hidden_size, output_gate, zoneout):
    """x2: [M, D], w: [D, S], b: [S] with S = 3H (fo) or 2H (f).
    Returns activated gates z, f, o (o is None when output_gate=False),
    each of shape [M, H]."""
    m, d = x2.shape
    s = w.shape[1]
    h = hidden_size
    n_out = 3 if output_gate else 2
    f_scale = float(1.0 - zoneout) if zoneout else 1.0

    tm = _pick_tile(m, 8, 1024)      # large row tiles -> close to HBM roofline
    tk = _pick_tile(d, 128, 512)     # lane-aligned K tiles when possible

    b2 = b.reshape(1, s)

    def kernel(x_ref, w_ref, b_ref, *refs):
        acc_ref = refs[-1]
        out_refs = refs[:-1]
        k = pl.program_id(1)

        @pl.when(k == 0)
        def _():
            acc_ref[...] = jnp.zeros_like(acc_ref)

        acc_ref[...] += jnp.dot(x_ref[...], w_ref[...],
                                preferred_element_type=jnp.float32)

        @pl.when(k == pl.num_programs(1) - 1)
        def _():
            y = acc_ref[...] + b_ref[...].astype(jnp.float32)
            z = jnp.tanh(y[:, 0:h])
            fg = jax.nn.sigmoid(y[:, h:2 * h]) * f_scale
            out_refs[0][...] = z.astype(out_refs[0].dtype)
            out_refs[1][...] = fg.astype(out_refs[1].dtype)
            if output_gate:
                og = jax.nn.sigmoid(y[:, 2 * h:3 * h])
                out_refs[2][...] = og.astype(out_refs[2].dtype)

    out_shapes = tuple(jax.ShapeDtypeStruct((m, h), x2.dtype)
                       for _ in range(n_out))
    out_specs = [pl.BlockSpec((tm, h), lambda i, k: (i, 0))
                 for _ in range(n_out)]

    outs = pl.pallas_call(
        kernel,
        out_shape=out_shapes,
        grid_spec=pltpu.PrefetchScalarGridSpec(
            num_scalar_prefetch=0,
            grid=(m // tm, d // tk),
            in_specs=[
                pl.BlockSpec((tm, tk), lambda i, k: (i, k)),   # x tile
                pl.BlockSpec((tk, s), lambda i, k: (k, 0)),    # stacked weights
                pl.BlockSpec((1, s), lambda i, k: (0, 0)),     # bias
            ],
            out_specs=out_specs,
            scratch_shapes=[pltpu.VMEM((tm, s), jnp.float32)],
        ),
        compiler_params=pltpu.CompilerParams(
            dimension_semantics=("parallel", "arbitrary")),
    )(x2, w, b2)

    if output_gate:
        return outs[0], outs[1], outs[2]
    return outs[0], outs[1], None


# ----------------------------------------------------------------------------
# Kernel 2: sequential fo-pooling recurrence along time
# ----------------------------------------------------------------------------
def _fo_pool(z3, f3, o3, h0):
    """z3/f3/(o3): [T, Bp, H] activated gates, h0: [Bp, H] initial cell state.
    Returns (h, c), each [T, Bp, H]."""
    t_len, bp, h = z3.shape
    has_o = o3 is not None

    def kernel(*refs):
        if has_o:
            z_ref, f_ref, o_ref, h0_ref, h_ref, c_ref, state = refs
        else:
            z_ref, f_ref, h0_ref, h_ref, c_ref, state = refs
            o_ref = None
        t = pl.program_id(0)

        @pl.when(t == 0)
        def _():
            state[...] = h0_ref[...].astype(jnp.float32)

        fg = f_ref[0].astype(jnp.float32)
        zg = z_ref[0].astype(jnp.float32)
        c_t = fg * zg + (1.0 - fg) * state[...]
        state[...] = c_t
        c_ref[0] = c_t.astype(c_ref.dtype)
        if has_o:
            h_ref[0] = (o_ref[0].astype(jnp.float32) * c_t).astype(h_ref.dtype)
        else:
            h_ref[0] = c_t.astype(h_ref.dtype)

    step_spec = pl.BlockSpec((1, bp, h), lambda t: (t, 0, 0))
    h0_spec = pl.BlockSpec((bp, h), lambda t: (0, 0))

    in_specs = [step_spec, step_spec] + ([step_spec] if has_o else []) + [h0_spec]
    inputs = [z3, f3] + ([o3] if has_o else []) + [h0]

    h_out, c_out = pl.pallas_call(
        kernel,
        out_shape=(jax.ShapeDtypeStruct((t_len, bp, h), z3.dtype),
                   jax.ShapeDtypeStruct((t_len, bp, h), z3.dtype)),
        grid_spec=pltpu.PrefetchScalarGridSpec(
            num_scalar_prefetch=0,
            grid=(t_len,),
            in_specs=in_specs,
            out_specs=[step_spec, step_spec],
            scratch_shapes=[pltpu.VMEM((bp, h), jnp.float32)],
        ),
        compiler_params=pltpu.CompilerParams(
            dimension_semantics=("arbitrary",)),
    )(*inputs)
    return h_out, c_out


# ----------------------------------------------------------------------------
# Full forward (layout plumbing stays in JAX; compute lives in the kernels)
# ----------------------------------------------------------------------------
def quasi_rnn_forward(x, w, b, *, hidden_size, bidirectional,
                      zoneout=0.0, output_gate=True, hidden=None):
    """JAX/Pallas equivalent of QuasiRNNLayer.forward (eval mode).
    x: [batch, seq, input_size];  w: [input_size, S];  b: [S]
    Returns (h, c_last) exactly like the PyTorch module."""
    hsz = hidden_size
    batch, _, _ = x.shape

    xt = jnp.swapaxes(x, 0, 1)                       # [T, B, D]
    if bidirectional:
        xt = jnp.concatenate([xt, xt[::-1]], axis=1)  # [T, 2B, D]
    t_len, bp, d = xt.shape

    x2 = xt.reshape(t_len * bp, d)
    z, f, o = _gate_projection(x2, w, b, hsz, output_gate, zoneout)

    z3 = z.reshape(t_len, bp, hsz)
    f3 = f.reshape(t_len, bp, hsz)
    o3 = o.reshape(t_len, bp, hsz) if o is not None else None

    if hidden is None:
        h0 = jnp.zeros((bp, hsz), x.dtype)
    else:
        h0 = hidden.astype(x.dtype)

    h3, c3 = _fo_pool(z3, f3, o3, h0)                 # [T, Bp, H] each

    h = jnp.swapaxes(h3, 0, 1)                        # [Bp, T, H]
    c = jnp.swapaxes(c3, 0, 1)
    if bidirectional:
        h = jnp.concatenate([h[:batch], h[batch:][:, ::-1]], axis=2)
        c = jnp.concatenate([c[:batch], c[batch:][:, ::-1]], axis=2)
    return h, c[-1, :, :]


# ----------------------------------------------------------------------------
# Pure-JAX reference (for correctness checking)
# ----------------------------------------------------------------------------
def _qrnn_reference(x, w, b, hidden_size, bidirectional,
                    zoneout=0.0, output_gate=True, hidden=None):
    hsz = hidden_size
    batch = x.shape[0]
    xt = jnp.swapaxes(x, 0, 1)
    if bidirectional:
        xt = jnp.concatenate([xt, xt[::-1]], axis=1)
    y = jnp.dot(xt, w, precision=jax.lax.Precision.HIGHEST) + b
    z = jnp.tanh(y[..., :hsz])
    f = jax.nn.sigmoid(y[..., hsz:2 * hsz])
    o = jax.nn.sigmoid(y[..., 2 * hsz:3 * hsz]) if output_gate else None
    if zoneout:
        f = f * (1.0 - zoneout)
    bp = xt.shape[1]
    c0 = jnp.zeros((bp, hsz), x.dtype) if hidden is None else hidden

    def step(c_prev, zf):
        z_t, f_t = zf
        c_t = f_t * z_t + (1.0 - f_t) * c_prev
        return c_t, c_t

    _, c = jax.lax.scan(step, c0, (z, f))
    h = o * c if o is not None else c
    c = jnp.swapaxes(c, 0, 1)
    h = jnp.swapaxes(h, 0, 1)
    if bidirectional:
        h = jnp.concatenate([h[:batch], h[batch:][:, ::-1]], axis=2)
        c = jnp.concatenate([c[:batch], c[batch:][:, ::-1]], axis=2)
    return h, c[-1, :, :]


# ----------------------------------------------------------------------------
if __name__ == "__main__":
    key = jax.random.PRNGKey(0)
    B, T, D, H = 2, 8, 32, 32
    k1, k2, k3 = jax.random.split(key, 3)
    x = jax.random.normal(k1, (B, T, D), dtype=jnp.float32)

    # Case 1: bidirectional QRNN-fo (output gate), zoneout = 0
    S = 3 * H
    W = jax.random.normal(k2, (D, S), dtype=jnp.float32) * 0.1
    bias = jax.random.normal(k3, (S,), dtype=jnp.float32) * 0.1

    h, c_last = quasi_rnn_forward(x, W, bias, hidden_size=H,
                                  bidirectional=True, zoneout=0.0,
                                  output_gate=True)
    h = jax.block_until_ready(h)
    c_last = jax.block_until_ready(c_last)
    h_ref, c_ref = _qrnn_reference(x, W, bias, H, True, 0.0, True)
    assert h.shape == (B, T, 2 * H)
    assert c_last.shape == (T, 2 * H)
    assert bool(jnp.allclose(h, h_ref, atol=5e-3, rtol=5e-3))
    assert bool(jnp.allclose(c_last, c_ref, atol=5e-3, rtol=5e-3))

    # Case 2: unidirectional QRNN-f (no output gate), eval-mode zoneout = 0.25
    S2 = 2 * H
    W2 = jax.random.normal(k2, (D, S2), dtype=jnp.float32) * 0.1
    bias2 = jax.random.normal(k3, (S2,), dtype=jnp.float32) * 0.1

    h2, c2_last = quasi_rnn_forward(x, W2, bias2, hidden_size=H,
                                    bidirectional=False, zoneout=0.25,
                                    output_gate=False)
    h2 = jax.block_until_ready(h2)
    c2_last = jax.block_until_ready(c2_last)
    h2_ref, c2_ref = _qrnn_reference(x, W2, bias2, H, False, 0.25, False)
    assert h2.shape == (B, T, H)
    assert c2_last.shape == (T, H)
    assert bool(jnp.allclose(h2, h2_ref, atol=5e-3, rtol=5e-3))
    assert bool(jnp.allclose(c2_last, c2_ref, atol=5e-3, rtol=5e-3))

    print("KERNEL_OK")
</pallas_src>

<mosaic_0001>
module attributes {stable_mosaic.version = 11 : i64} {
  func.func @kernel(%arg0: i32, %arg1: i32, %arg2: memref<32x32xf32, #tpu.memory_space<vmem>>, %arg3: memref<32x96xf32, #tpu.memory_space<vmem>>, %arg4: memref<1x96xf32, #tpu.memory_space<vmem>>, %arg5: memref<32x32xf32, #tpu.memory_space<vmem>>, %arg6: memref<32x32xf32, #tpu.memory_space<vmem>>, %arg7: memref<32x32xf32, #tpu.memory_space<vmem>>, %arg8: memref<32x96xf32, #tpu.memory_space<vmem>>) attributes {dimension_semantics = [#tpu.dimension_semantics<parallel>, #tpu.dimension_semantics<arbitrary>], iteration_bounds = array<i64: 1, 1>, scalar_prefetch = 0 : i64, scratch_operands = 1 : i64, tpu.core_type = #tpu.core_type<tc>, window_params = [{transform_indices = @transform_0, window_bounds = array<i64: 32, 32>}, {transform_indices = @transform_1, window_bounds = array<i64: 32, 96>}, {pipeline_mode = #tpu.pipeline_mode<synchronous>, transform_indices = @transform_2, window_bounds = array<i64: 1, 96>}, {transform_indices = @transform_3, window_bounds = array<i64: 32, 32>}, {transform_indices = @transform_4, window_bounds = array<i64: 32, 32>}, {transform_indices = @transform_5, window_bounds = array<i64: 32, 32>}]} {
    %c0_i32 = arith.constant 0 : i32
    %0 = arith.cmpi eq, %arg1, %c0_i32 : i32
    %1 = arith.extui %0 : i1 to i32
    %c0_i32_0 = arith.constant 0 : i32
    %2 = arith.cmpi ne, %1, %c0_i32_0 : i32
    scf.if %2 {
      %cst_10 = arith.constant 0.000000e+00 : f32
      %12 = vector.broadcast %cst_10 : f32 to vector<32x96xf32>
      %c0_11 = arith.constant 0 : index
      %c0_12 = arith.constant 0 : index
      %13 = vector.load %arg8[%c0_11, %c0_12] : memref<32x96xf32, #tpu.memory_space<vmem>>, vector<32x96xf32>
      tpu.vector_store %arg8[%c0_11, %c0_12], %12 {strides = array<i32>} : memref<32x96xf32, #tpu.memory_space<vmem>>, vector<32x96xf32>,
    } else {
    }
    %c0 = arith.constant 0 : index
    %c0_1 = arith.constant 0 : index
    %3 = vector.load %arg8[%c0, %c0_1] : memref<32x96xf32, #tpu.memory_space<vmem>>, vector<32x96xf32>
    %c0_2 = arith.constant 0 : index
    %c0_3 = arith.constant 0 : index
    %4 = vector.load %arg2[%c0_2, %c0_3] : memref<32x32xf32, #tpu.memory_space<vmem>>, vector<32x32xf32>
    %c0_4 = arith.constant 0 : index
    %c0_5 = arith.constant 0 : index
    %5 = vector.load %arg3[%c0_4, %c0_5] : memref<32x96xf32, #tpu.memory_space<vmem>>, vector<32x96xf32>
    %cst = arith.constant dense<0.000000e+00> : vector<32x96xf32>
    %6 = tpu.matmul %4, %5, %cst {dimension_numbers = #tpu.dot_dimension_numbers<[1], [0], [0], [1], [0, 0, 1, 1], [], []>} : vector<32x32xf32>, vector<32x96xf32>, vector<32x96xf32> -> vector<32x96xf32>
    %7 = arith.addf %3, %6 : vector<32x96xf32>
    %c0_6 = arith.constant 0 : index
    %c0_7 = arith.constant 0 : index
    %8 = vector.load %arg8[%c0_6, %c0_7] : memref<32x96xf32, #tpu.memory_space<vmem>>, vector<32x96xf32>
    tpu.vector_store %arg8[%c0_6, %c0_7], %7 {strides = array<i32>} : memref<32x96xf32, #tpu.memory_space<vmem>>, vector<32x96xf32>,
    %c0_i32_8 = arith.constant 0 : i32
    %9 = arith.cmpi eq, %arg1, %c0_i32_8 : i32
    %10 = arith.extui %9 : i1 to i32
    %c0_i32_9 = arith.constant 0 : i32
    %11 = arith.cmpi ne, %10, %c0_i32_9 : i32
    scf.if %11 {
      %c0_10 = arith.constant 0 : index
      %c0_11 = arith.constant 0 : index
      %12 = vector.load %arg8[%c0_10, %c0_11] : memref<32x96xf32, #tpu.memory_space<vmem>>, vector<32x96xf32>
      %c0_12 = arith.constant 0 : index
      %c0_13 = arith.constant 0 : index
      %13 = vector.load %arg4[%c0_12, %c0_13] : memref<1x96xf32, #tpu.memory_space<vmem>>, vector<1x96xf32>
      %14 = vector.broadcast %13 : vector<1x96xf32> to vector<32x96xf32>
      %15 = arith.addf %12, %14 : vector<32x96xf32>
      %16 = vector.extract_strided_slice %15 {offsets = [0, 0], sizes = [32, 32], strides = [1, 1]} : vector<32x96xf32> to vector<32x32xf32>
      %17 = math.tanh %16 : vector<32x32xf32>
      %18 = vector.extract_strided_slice %15 {offsets = [0, 32], sizes = [32, 32], strides = [1, 1]} : vector<32x96xf32> to vector<32x32xf32>
      %19 = arith.negf %18 : vector<32x32xf32>
      %20 = math.exp %19 : vector<32x32xf32>
      %cst_14 = arith.constant 1.000000e+00 : f32
      %21 = vector.broadcast %cst_14 : f32 to vector<32x32xf32>
      %22 = arith.addf %21, %20 : vector<32x32xf32>
      %23 = arith.divf %21, %22 : vector<32x32xf32>
      %cst_15 = arith.constant 1.000000e+00 : f32
      %24 = vector.broadcast %cst_15 : f32 to vector<32x32xf32>
      %25 = arith.mulf %23, %24 : vector<32x32xf32>
      %c0_16 = arith.constant 0 : index
      %c0_17 = arith.constant 0 : index
      %26 = vector.load %arg5[%c0_16, %c0_17] : memref<32x32xf32, #tpu.memory_space<vmem>>, vector<32x32xf32>
      tpu.vector_store %arg5[%c0_16, %c0_17], %17 {strides = array<i32>} : memref<32x32xf32, #tpu.memory_space<vmem>>, vector<32x32xf32>,
      %c0_18 = arith.constant 0 : index
      %c0_19 = arith.constant 0 : index
      %27 = vector.load %arg6[%c0_18, %c0_19] : memref<32x32xf32, #tpu.memory_space<vmem>>, vector<32x32xf32>
      tpu.vector_store %arg6[%c0_18, %c0_19], %25 {strides = array<i32>} : memref<32x32xf32, #tpu.memory_space<vmem>>, vector<32x32xf32>,
      %28 = vector.extract_strided_slice %15 {offsets = [0, 64], sizes = [32, 32], strides = [1, 1]} : vector<32x96xf32> to vector<32x32xf32>
      %29 = arith.negf %28 : vector<32x32xf32>
      %30 = math.exp %29 : vector<32x32xf32>
      %cst_20 = arith.constant 1.000000e+00 : f32
      %31 = vector.broadcast %cst_20 : f32 to vector<32x32xf32>
      %32 = arith.addf %31, %30 : vector<32x32xf32>
      %33 = arith.divf %31, %32 : vector<32x32xf32>
      %c0_21 = arith.constant 0 : index
      %c0_22 = arith.constant 0 : index
      %34 = vector.load %arg7[%c0_21, %c0_22] : memref<32x32xf32, #tpu.memory_space<vmem>>, vector<32x32xf32>
      tpu.vector_store %arg7[%c0_21, %c0_22], %33 {strides = array<i32>} : memref<32x32xf32, #tpu.memory_space<vmem>>, vector<32x32xf32>,
    } else {
    }
    return
  }
  func.func @transform_0(%arg0: i32, %arg1: i32) -> (i32, i32) {
    %c0_i32 = arith.constant 0 : i32
    return %arg0, %arg1 : i32, i32
  }
  func.func @transform_1(%arg0: i32, %arg1: i32) -> (i32, i32) {
    %c0_i32 = arith.constant 0 : i32
    %c0_i32_0 = arith.constant 0 : i32
    return %arg1, %c0_i32 : i32, i32
  }
  func.func @transform_2(%arg0: i32, %arg1: i32) -> (i32, i32) {
    %c0_i32 = arith.constant 0 : i32
    %c0_i32_0 = arith.constant 0 : i32
    %c0_i32_1 = arith.constant 0 : i32
    return %c0_i32, %c0_i32_0 : i32, i32
  }
  func.func @transform_3(%arg0: i32, %arg1: i32) -> (i32, i32) {
    %c0_i32 = arith.constant 0 : i32
    %c0_i32_0 = arith.constant 0 : i32
    return %arg0, %c0_i32 : i32, i32
  }
  func.func @transform_4(%arg0: i32, %arg1: i32) -> (i32, i32) {
    %c0_i32 = arith.constant 0 : i32
    %c0_i32_0 = arith.constant 0 : i32
    return %arg0, %c0_i32 : i32, i32
  }
  func.func @transform_5(%arg0: i32, %arg1: i32) -> (i32, i32) {
    %c0_i32 = arith.constant 0 : i32
    %c0_i32_0 = arith.constant 0 : i32
    return %arg0, %c0_i32 : i32, i32
  }
}

</mosaic_0001>

<bundles_post_ra>
// kernel: tpu_custom_call.1
= control target key start
LH: loop header
LB: loop body
LE: loop exit
PB: predicated region body
PF: predicated region fallthrough
CT: control target
= control target key end

     0   :  { %11 = vsyncpa [#allocation4], 0  ;;  %s588_s0 = inlined_call_operand.hbm [shape: f32[32,32], index: 0, kind: input, shape index: {}]   ;;  %s589_s1 = inlined_call_operand.hbm [shape: f32[32,96], index: 1, kind: input, shape index: {}]   ;;  %s590_s2 = inlined_call_operand.vmem [shape: f32[1,96], index: 2, kind: input, shape index: {}]   ;;  %s591_s3 = inlined_call_operand.hbm [shape: f32[32,32], index: 3, kind: output, shape index: {0}]   ;;  %s592_s4 = inlined_call_operand.hbm [shape: f32[32,32], index: 4, kind: output, shape index: {1}]   ;;  %s593_s5 = inlined_call_operand.hbm [shape: f32[32,32], index: 5, kind: output, shape index: {2}]  }
   0x1   :  { %12 = vsyncpa [#allocation7], 0 }
   0x2   :  { %13 = vsyncpa [#allocation5], 0 }
   0x3   :  { %14 = vsyncpa [#allocation10], 0  ;;  %s491_s18 = smov [#allocation3]  }
   0x4   :  { %s20_s19 = sshll.u32 %s491_s18, 4  ;;  %s21_s19 = int_to_ptr.vmem [resolvable:$true] %s20_s19 }
   0x5   :  { %s391_s20 = scalar_lea.vmem %s21_s19, 512  ;;  %p396_p1 = scmp.lt.s32.totalorder %s21_s19, %s21_s19 }
   0x6   :  { %p392_p0 = scmp.ne.s32.totalorder %s21_s19, %s391_s20  ;;  %p397_p2 = scmp.lt.s32.totalorder %s391_s20, %s391_s20 }
   0x8   :  { %p398_p3 = por %p397_p2, %p396_p1 }
   0xa   :  { %p399_p4 = pnand %p398_p3, %p392_p0 }
   0xc   :  { %402 = shalt.err (!%p399_p4)
}
   0xd   :  { %s492_s21 = smov 128   ;;  %s493_s22 = smov 8  }
   0xe   :  { %26 = dma.hbm_to_vmem [thread:$0]  %s588_s0, 512, %s21_s19, [#allocation4], %s492_s21, %s492_s21, %s493_s22  }
   0xf   :  { %s494_s25 = smov [#allocation6]  }
  0x10   :  { %s32_s26 = sshll.u32 %s494_s25, 4  ;;  %s33_s26 = int_to_ptr.vmem [resolvable:$true] %s32_s26 }
  0x11   :  { %s411_s27 = scalar_lea.vmem %s33_s26, 512  ;;  %p416_p6 = scmp.lt.s32.totalorder %s33_s26, %s33_s26 }
  0x12   :  { %p412_p5 = scmp.ne.s32.totalorder %s33_s26, %s411_s27  ;;  %p417_p7 = scmp.lt.s32.totalorder %s411_s27, %s411_s27 }
  0x14   :  { %p418_p8 = por %p417_p7, %p416_p6 }
  0x16   :  { %p419_p9 = pnand %p418_p8, %p412_p5 }
  0x18   :  { %422 = shalt.err (!%p419_p9)
}
  0x19   :  { %38 = dma.hbm_to_vmem [thread:$0]  %s589_s1, 512, %s33_s26, [#allocation7], %s492_s21, %s492_s21, %s493_s22  }
  0x1a   :  { %483 = dma.done.wait [#allocation4], 512  }
  0x1b   :  { %484 = vsyncadd [#allocation4], 4294966784 }
  0x1c   :  { %485 = dma.done.wait [#allocation7], 512  }
  0x1d   :  { %486 = vsyncadd [#allocation7], 4294966784  ;;  %vm51_vm0 = vcmask 785408   ;;  %v495_v0 = vmov 0.0   ;;  %v67_v1 = vld [vmem:[#allocation6 + $0x18] sm:$0xff]  ;;  %v66_v2 = vld [vmem:[#allocation6 + $0x10] sm:$0xff] }
  0x1e   :  { %53 = vst.msk [vmem:[#allocation2 + $0x8] sm:$0xff] %vm51_vm0, %v495_v0  ;;  %52 = vst.msk [vmem:[#allocation2] sm:$0xff] %vm51_vm0, %v495_v0  ;;  %327 = vmatprep.subr.mxu0 %v67_v1  ;;  %341 = vmatprep.subr.mxu1 %v67_v1  ;;  %v65_v3 = vld [vmem:[#allocation6 + $0x8] sm:$0xff]  ;;  %v64_v4 = vld [vmem:[#allocation6] sm:$0xff]  ;;  %vm68_vm1 = vcmask 261120   ;;  %s497_s30 = smov [#allocation8]  }
  0x1f   :  { %54 = vst.msk [vmem:[#allocation2 + $0x10] sm:$0xff] %vm51_vm0, %v495_v0  ;;  %55 = vst.msk [vmem:[#allocation2 + $0x18] sm:$0xff] %vm51_vm0, %v495_v0  ;;  %328 = vmatpush3.msra.mxu0 %v67_v1  ;;  %345 = vmatpush3.msra.mxu1 %v67_v1  ;;  %v60_v5 = vld [vmem:[#allocation3] sm:$0xff]  ;;  %v62_v6 = vld [vmem:[#allocation3 + $0x10] sm:$0xff]  ;;  %s266_s6 = sshll.u32 %s497_s30, 4  ;;  %s498_s7 = smov 64   ;;  %s267_s6 = int_to_ptr.vmem [resolvable:$true] %s266_s6 }
  0x20   :  { %329 = vmatprep.subr.mxu0 %v66_v2  ;;  %342 = vmatprep.subr.mxu1 %v66_v2  ;;  %v61_v7 = vld [vmem:[#allocation3 + $0x8] sm:$0xff]  ;;  %v63_v8 = vld [vmem:[#allocation3 + $0x18] sm:$0xff]  ;;  %v314_v21 = vld [vmem:[%s590_s2] ss:$0 sm:$0xff]  ;;  %s496_s2 = smov 96   ;;  %s423_s8 = scalar_lea.vmem %s267_s6, 512 }
  0x21   :  { %330 = vmatpush3.msra.mxu0 %v66_v2  ;;  %346 = vmatpush3.msra.mxu1 %v66_v2  ;;  %p424_p10 = scmp.ne.s32.totalorder %s267_s6, %s423_s8  ;;  %p428_p11 = scmp.lt.s32.totalorder %s267_s6, %s267_s6 }
  0x22   :  { %331 = vmatprep.subr.mxu0 %v65_v3  ;;  %343 = vmatprep.subr.mxu1 %v65_v3  ;;  %p429_p12 = scmp.lt.s32.totalorder %s423_s8, %s423_s8 }
  0x23   :  { %332 = vmatpush3.msra.mxu0 %v65_v3  ;;  %347 = vmatpush3.msra.mxu1 %v65_v3 }
  0x24   :  { %333 = vmatprep.subr.mxu0 %v64_v4  ;;  %344 = vmatprep.subr.mxu1 %v64_v4  ;;  %p430_p13 = por %p429_p12, %p428_p11 }
  0x25   :  { %334 = vmatpush3.msra.mxu0 %v64_v4  ;;  %348 = vmatpush3.msra.mxu1 %v64_v4  ;;  %v57_v9 = vld [vmem:[#allocation2 + $0x8] sm:$0xff]  ;;  %v56_v13 = vld [vmem:[#allocation2] sm:$0xff] }
  0x26   :  { %335 = vmatprep.mubr.msk.f32.mxu0 %vm68_vm1, %v60_v5  ;;  %338 = vmatprep.mubr.msk.f32.mxu1 %vm68_vm1, %v62_v6  ;;  %v59_v10 = vld [vmem:[#allocation2 + $0x18] sm:$0xff]  ;;  %v58_v14 = vld [vmem:[#allocation2 + $0x10] sm:$0xff]  ;;  %p431_p0 = pnand %p430_p13, %p424_p10 }
  0x27   :  { %336 = vmatmul.mubr.msk.f32.vlgmr.msra.gmra.mxu0 %vm68_vm1, %v61_v7  ;;  %339 = vmatmul.mubr.msk.f32.vlgmr.msra.gmra.mxu1 %vm68_vm1, %v63_v8 }
  0xe7   :  { %v337_v11 = vpop.f32.mrf.mxu0  ;;  %v340_v12 = vpop.f32.mrf.mxu1 }
  0xe8   :  { %v167_v15 = vadd.f32 %v337_v11, %v57_v9  ;;  %v169_v16 = vadd.f32 %v340_v12, %v59_v10 }
  0xe9   :  { %v147_v17 = vpop.f32.mrf.mxu0  ;;  %v157_v18 = vpop.f32.mrf.mxu1 }
  0xea   :  { %172 = vst.msk [vmem:[#allocation2 + $0x8] sm:$0xff] %vm51_vm0, %v167_v15  ;;  %174 = vst.msk [vmem:[#allocation2 + $0x18] sm:$0xff] %vm51_vm0, %v169_v16  ;;  %v166_v19 = vadd.f32 %v147_v17, %v56_v13  ;;  %v168_v20 = vadd.f32 %v157_v18, %v58_v14 }
  0xec   :  { %171 = vst.msk [vmem:[#allocation2] sm:$0xff] %vm51_vm0, %v166_v19  ;;  %173 = vst.msk [vmem:[#allocation2 + $0x10] sm:$0xff] %vm51_vm0, %v168_v20 }
  0xf1   :  { %v181_v22 = vld [vmem:[#allocation2 + $0x18] sm:$0xff]  ;;  %v179_v23 = vld [vmem:[#allocation2 + $0x8] sm:$0xff] }
  0xf2   :  { %v192_v24 = vadd.f32 %v314_v21, %v181_v22  ;;  %v190_v25 = vadd.f32 %v314_v21, %v179_v23 }
  0xf3   :  { %v178_v26 = vld [vmem:[#allocation2] sm:$0xff]  ;;  %v180_v27 = vld [vmem:[#allocation2 + $0x10] sm:$0xff] }
  0xf4   :  { %v318_v28 = vmul.f32 -1.442695, %v192_v24  ;;  %v189_v29 = vadd.f32 %v314_v21, %v178_v26  ;;  %v191_v30 = vadd.f32 %v314_v21, %v180_v27  ;;  %359 = vtanh.f32 %v192_v24 }
  0xf5   :  { %361 = vtanh.f32 %v190_v25  ;;  %v316_v33 = vmul.f32 -1.442695, %v190_v25 }
  0xf6   :  { %363 = vpow2.f32 %v318_v28  ;;  %v315_v31 = vmul.f32 -1.442695, %v189_v29  ;;  %v317_v32 = vmul.f32 -1.442695, %v191_v30 }
  0xf7   :  { %365 = vtanh.f32 %v189_v29 }
  0xf8   :  { %367 = vtanh.f32 %v191_v30 }
  0xf9   :  { %369 = vpow2.f32 %v315_v31 }
  0xfa   :  { %371 = vpow2.f32 %v317_v32 }
  0xfb   :  { %373 = vpow2.f32 %v316_v33 }
 0x101   :  { %v360_v34 = vpop.eup %359 }
 0x102   :  { %v362_v35 = vpop.eup %361  ;;  %224 = vst.msk [vmem:[#allocation8 + $0x18] sm:$0xff] %vm68_vm1, %v360_v34 }
 0x103   :  { %v364_v36 = vpop.eup %363  ;;  %222 = vst.msk [vmem:[#allocation8 + $0x8] sm:$0xff] %vm68_vm1, %v362_v35 }
 0x104   :  { %v366_v37 = vpop.eup %365  ;;  %v212_v38 = vadd.f32 1.0, %v364_v36 }
 0x105   :  { %v368_v39 = vpop.eup %367  ;;  %221 = vst.msk [vmem:[#allocation8] sm:$0xff] %vm68_vm1, %v366_v37 }
 0x106   :  { %v370_v40 = vpop.eup %369  ;;  %375 = vrcp.f32 %v212_v38  ;;  %223 = vst.msk [vmem:[#allocation8 + $0x10] sm:$0xff] %vm68_vm1, %v368_v39 }
 0x107   :  { %v372_v41 = vpop.eup %371  ;;  %v209_v44 = vadd.f32 1.0, %v370_v40 }
 0x108   :  { %v374_v42 = vpop.eup %373  ;;  %v211_v45 = vadd.f32 1.0, %v372_v41 }
 0x109   :  { %v210_v43 = vadd.f32 1.0, %v374_v42 }
 0x10b   :  { %377 = vrcp.f32 %v210_v43 }
 0x10c   :  { %379 = vrcp.f32 %v209_v44 }
 0x10d   :  { %381 = vrcp.f32 %v211_v45 }
 0x113   :  { %v376_v46 = vpop.eup %375 }
 0x114   :  { %235 = vrot.lane.b32.xlu1 %v376_v46, %s496_s2 }
 0x118   :  { %v378_v47 = vpop.eup %377 }
 0x119   :  { %231 = vrot.lane.b32.xlu0 %v378_v47, %s496_s2  ;;  %247 = vrot.lane.b32.xlu1 %v378_v47, %s498_s7 }
 0x11a   :  { %434 = shalt.err (!%p431_p0)
}
 0x11b   :  { %272 = dma.vmem_to_hbm [thread:$0]  %s267_s6, 512, %s591_s3, [#allocation5], %s492_s21, %s492_s21, %s493_s22   ;;  %v380_v48 = vpop.eup %379 }
 0x11c   :  { %v382_v49 = vpop.eup %381  ;;  %s499_s11 = smov [#allocation9]  }
 0x11d   :  { %229 = vrot.lane.b32.xlu0 %v380_v48, %s496_s2  ;;  %233 = vrot.lane.b32.xlu1 %v382_v49, %s496_s2  ;;  %s278_s12 = sshll.u32 %s499_s11, 4  ;;  %s279_s12 = int_to_ptr.vmem [resolvable:$true] %s278_s12 }
 0x11e   :  { %s443_s3 = scalar_lea.vmem %s279_s12, 512  ;;  %p448_p2 = scmp.lt.s32.totalorder %s279_s12, %s279_s12 }
 0x11f   :  { %p444_p1 = scmp.ne.s32.totalorder %s279_s12, %s443_s3  ;;  %p449_p3 = scmp.lt.s32.totalorder %s443_s3, %s443_s3 }
 0x121   :  { %245 = vrot.lane.b32.xlu0 %v380_v48, %s498_s7  ;;  %251 = vrot.lane.b32.xlu1 %v376_v46, %s498_s7  ;;  %p450_p4 = por %p449_p3, %p448_p2 }
 0x123   :  { %p451_p5 = pnand %p450_p4, %p444_p1 }
 0x125   :  { %249 = vrot.lane.b32.xlu0 %v382_v49, %s498_s7 }
 0x186   :  { %v236_v50 = vpop.permute.xlu1 %235 }
 0x187   :  { %244 = vst.msk [vmem:[#allocation9 + $0x18] sm:$0xff] %vm68_vm1, %v236_v50 }
 0x18b   :  { %v232_v51 = vpop.permute.xlu0 %231  ;;  %v248_v52 = vpop.permute.xlu1 %247 }
 0x18c   :  { %242 = vst.msk [vmem:[#allocation9 + $0x8] sm:$0xff] %vm68_vm1, %v232_v51  ;;  %258 = vst.msk [vmem:[#allocation11 + $0x8] sm:$0xff] %vm68_vm1, %v248_v52 }
 0x18f   :  { %v230_v53 = vpop.permute.xlu0 %229  ;;  %v234_v54 = vpop.permute.xlu1 %233 }
 0x190   :  { %241 = vst.msk [vmem:[#allocation9] sm:$0xff] %vm68_vm1, %v230_v53  ;;  %243 = vst.msk [vmem:[#allocation9 + $0x10] sm:$0xff] %vm68_vm1, %v234_v54 }
 0x191   :  { %454 = shalt.err (!%p451_p5)
}
 0x192   :  { %284 = dma.vmem_to_hbm [thread:$0]  %s279_s12, 512, %s592_s4, [#allocation10], %s492_s21, %s492_s21, %s493_s22  }
 0x193   :  { %v246_v55 = vpop.permute.xlu0 %245  ;;  %v252_v56 = vpop.permute.xlu1 %251  ;;  %s500_s15 = smov [#allocation11]  }
 0x194   :  { %s290_s16 = sshll.u32 %s500_s15, 4  ;;  %257 = vst.msk [vmem:[#allocation11] sm:$0xff] %vm68_vm1, %v246_v55  ;;  %260 = vst.msk [vmem:[#allocation11 + $0x18] sm:$0xff] %vm68_vm1, %v252_v56  ;;  %s291_s16 = int_to_ptr.vmem [resolvable:$true] %s290_s16 }
 0x195   :  { %s463_s17 = scalar_lea.vmem %s291_s16, 512  ;;  %p468_p7 = scmp.lt.s32.totalorder %s291_s16, %s291_s16 }
 0x196   :  { %p464_p6 = scmp.ne.s32.totalorder %s291_s16, %s463_s17  ;;  %p469_p8 = scmp.lt.s32.totalorder %s463_s17, %s463_s17 }
 0x197   :  { %v250_v57 = vpop.permute.xlu0 %249 }
 0x198   :  { %259 = vst.msk [vmem:[#allocation11 + $0x10] sm:$0xff] %vm68_vm1, %v250_v57  ;;  %p470_p9 = por %p469_p8, %p468_p7 }
 0x19a   :  { %p471_p10 = pnand %p470_p9, %p464_p6 }
 0x19c   :  { %474 = shalt.err (!%p471_p10)
}
 0x19d   :  { %296 = dma.vmem_to_hbm [thread:$0]  %s291_s16, 512, %s593_s5, [#allocation10], %s492_s21, %s492_s21, %s493_s22  }
 0x19e   :  { %487 = dma.done.wait [#allocation5], 512  }
 0x19f   :  { %488 = vsyncadd [#allocation5], 4294966784 }
 0x1a0   :  { %489 = dma.done.wait [#allocation10], 1024  }
 0x1a1   :  { %490 = vsyncadd [#allocation10], 4294966272 }
 0x1a2   :  { %306 = vsyncpa [#allocation4], 1 }
 0x1a3   :  { %307 = vsyncpa [#allocation7], 1 }
 0x1a4   :  { %308 = vsyncpa [#allocation5], 1 }
 0x1a5   :  { %309 = vsyncpa [#allocation10], 1 }

</bundles_post_ra>
